<compile_context>
chip_gen: v7x
topology: tpu7x:2x2x1
jax: 0.10.0
libtpu: 0.0.40
codegen_flags: <defaults>
</compile_context>

<pallas_src>
import math

import jax
import jax.numpy as jnp
from jax.experimental import pallas as pl
from jax.experimental.pallas import tpu as pltpu

# ---------------- problem sizes (small, consistent with the module) ----------------
B, S, D = 2, 8, 32          # batch, seq, d_model
H = 4                       # attention heads
DH = D // H                 # head dim
DFF = 64                    # feed-forward hidden
EPS = 1e-12                 # LayerNorm eps (matches module default)
N = B * S                   # all token rows handled in one grid-less kernel step


def _layer_norm(z, gamma, beta):
    # LayerNorm over last dim: mean + biased variance (torch var(unbiased=False)),
    # rsqrt on the EUP instead of a VPU divide.
    mean = jnp.mean(z, axis=-1, keepdims=True)
    var = jnp.mean(jnp.square(z - mean), axis=-1, keepdims=True)
    return gamma * ((z - mean) * jax.lax.rsqrt(var + EPS)) + beta


# ---------------- standalone LayerNorm kernel (the spec module) ----------------
def layer_norm_kernel(x_ref, g_ref, b_ref, o_ref):
    o_ref[...] = _layer_norm(x_ref[...], g_ref[...], b_ref[...]).astype(o_ref.dtype)


def layer_norm(x, gamma, beta):
    # x: (..., D). Flatten leading dims; single grid-less pallas_call (full-array
    # VMEM blocks, no BlockSpec/grid needed at this size).
    lead = x.shape[:-1]
    n = 1
    for s in lead:
        n *= s
    out = pl.pallas_call(
        layer_norm_kernel,
        out_shape=jax.ShapeDtypeStruct((n, x.shape[-1]), x.dtype),
    )(x.reshape(n, x.shape[-1]), gamma.reshape(1, -1), beta.reshape(1, -1))
    return out.reshape(*lead, x.shape[-1])


# ---------------- fused encoder-layer kernel ----------------
def encoder_layer_kernel(x_ref, wqkv_ref, bqkv_ref, wo_ref, bo_ref,
                         ln0_g_ref, ln0_b_ref, w1_ref, b1_ref, w2_ref, b2_ref,
                         ln1_g_ref, ln1_b_ref, o_ref, ctx_ref):
    x = x_ref[...]                                            # (N, D), f32

    # Fused QKV projection: one (N, D) @ (D, 3D) MXU pass instead of three.
    qkv = jnp.dot(x, wqkv_ref[...], preferred_element_type=jnp.float32) + bqkv_ref[...]
    scale = 1.0 / math.sqrt(DH)
    q = (qkv[:, 0 * D:1 * D] * scale).reshape(B, S, D)        # fold 1/sqrt(dh) into q once
    k = qkv[:, 1 * D:2 * D].reshape(B, S, D)
    v = qkv[:, 2 * D:3 * D].reshape(B, S, D)

    # Attention: score / PV matmuls batched over B; head outputs written straight
    # into the VMEM scratch at their final lane offsets (no concatenate shuffle).
    for h in range(H):                                        # static unroll, H = 4
        sl = slice(h * DH, (h + 1) * DH)
        s = jnp.einsum("bqd,bkd->bqk", q[:, :, sl], k[:, :, sl],
                       preferred_element_type=jnp.float32)    # (B, S, S)
        s = s - jnp.max(s, axis=-1, keepdims=True)
        p = jnp.exp(s)
        p = p * pl.reciprocal(jnp.sum(p, axis=-1, keepdims=True), approx=True)
        ctx_ref[:, :, sl] = jnp.einsum("bqk,bkd->bqd", p, v[:, :, sl],
                                       preferred_element_type=jnp.float32)

    ctx = ctx_ref[...].reshape(N, D)
    attn = jnp.dot(ctx, wo_ref[...], preferred_element_type=jnp.float32) + bo_ref[...]

    # Sublayer 0: x = LayerNorm(x + attn(x))      (dropout = identity, eval mode)
    x1 = _layer_norm(x + attn, ln0_g_ref[...], ln0_b_ref[...])

    # Feed-forward: Linear -> ReLU -> Linear
    hdn = jnp.dot(x1, w1_ref[...], preferred_element_type=jnp.float32) + b1_ref[...]
    hdn = jnp.maximum(hdn, 0.0)
    ff = jnp.dot(hdn, w2_ref[...], preferred_element_type=jnp.float32) + b2_ref[...]

    # Sublayer 1: out = LayerNorm(x1 + ffn(x1))
    o_ref[...] = _layer_norm(x1 + ff, ln1_g_ref[...], ln1_b_ref[...]).astype(o_ref.dtype)


@jax.jit
def encoder_layer_forward(x, params):
    p = params
    # Weight fusion done once in the wrapper (constant-folded by XLA).
    wqkv = jnp.concatenate([p["wq"], p["wk"], p["wv"]], axis=1)   # (D, 3D)
    bqkv = jnp.concatenate([p["bq"], p["bk"], p["bv"]], axis=1)   # (1, 3D)
    out = pl.pallas_call(
        encoder_layer_kernel,
        out_shape=jax.ShapeDtypeStruct((N, D), x.dtype),
        scratch_shapes=[pltpu.VMEM((B, S, D), jnp.float32)],      # per-head context slab
    )(x.reshape(N, D), wqkv, bqkv, p["wo"], p["bo"],
      p["ln0_g"], p["ln0_b"], p["w1"], p["b1"], p["w2"], p["b2"],
      p["ln1_g"], p["ln1_b"])
    return out.reshape(B, S, D)


# ---------------- pure-JAX references ----------------
def layer_norm_reference(x, gamma, beta):
    m = x.mean(-1, keepdims=True)
    v = ((x - m) ** 2).mean(-1, keepdims=True)
    return gamma * (x - m) / jnp.sqrt(v + EPS) + beta


def reference_forward(x, p):
    def attn_ref(x):
        q = x @ p["wq"] + p["bq"]
        k = x @ p["wk"] + p["bk"]
        v = x @ p["wv"] + p["bv"]
        qh = q.reshape(B, S, H, DH).transpose(0, 2, 1, 3)
        kh = k.reshape(B, S, H, DH).transpose(0, 2, 1, 3)
        vh = v.reshape(B, S, H, DH).transpose(0, 2, 1, 3)
        s = jnp.einsum("bhqd,bhkd->bhqk", qh, kh) / math.sqrt(DH)
        pw = jax.nn.softmax(s, axis=-1)
        o = jnp.einsum("bhqk,bhkd->bhqd", pw, vh)
        o = o.transpose(0, 2, 1, 3).reshape(B, S, D)
        return o @ p["wo"] + p["bo"]

    x1 = layer_norm_reference(x + attn_ref(x), p["ln0_g"], p["ln0_b"])
    ff = jnp.maximum(x1 @ p["w1"] + p["b1"], 0.0) @ p["w2"] + p["b2"]
    return layer_norm_reference(x1 + ff, p["ln1_g"], p["ln1_b"])


# ---------------- deterministic parameter init ----------------
def init_params(key):
    ks = jax.random.split(key, 8)
    sc = 0.1
    return {
        "wq": sc * jax.random.normal(ks[0], (D, D), jnp.float32),
        "bq": jnp.zeros((1, D), jnp.float32),
        "wk": sc * jax.random.normal(ks[1], (D, D), jnp.float32),
        "bk": jnp.zeros((1, D), jnp.float32),
        "wv": sc * jax.random.normal(ks[2], (D, D), jnp.float32),
        "bv": jnp.zeros((1, D), jnp.float32),
        "wo": sc * jax.random.normal(ks[3], (D, D), jnp.float32),
        "bo": sc * jax.random.normal(ks[4], (1, D), jnp.float32),
        "w1": sc * jax.random.normal(ks[5], (D, DFF), jnp.float32),
        "b1": sc * jax.random.normal(ks[6], (1, DFF), jnp.float32),
        "w2": sc * jax.random.normal(ks[7], (DFF, D), jnp.float32),
        "b2": jnp.zeros((1, D), jnp.float32),
        # LayerNorm params (module init: gamma=1, beta=0)
        "ln0_g": jnp.ones((1, D), jnp.float32),
        "ln0_b": jnp.zeros((1, D), jnp.float32),
        "ln1_g": jnp.ones((1, D), jnp.float32),
        "ln1_b": jnp.zeros((1, D), jnp.float32),
    }


if __name__ == "__main__":
    key = jax.random.PRNGKey(0)
    kx, kp, kg, kb = jax.random.split(key, 4)
    x = jax.random.normal(kx, (B, S, D), jnp.float32)
    params = init_params(kp)

    # 1) standalone LayerNorm kernel (the spec module), with non-trivial gamma/beta
    gamma = 1.0 + 0.1 * jax.random.normal(kg, (D,), jnp.float32)
    beta = 0.1 * jax.random.normal(kb, (D,), jnp.float32)
    ln_out = jax.block_until_ready(jax.jit(layer_norm)(x, gamma, beta))
    ln_ref = layer_norm_reference(x, gamma, beta)
    assert ln_out.shape == x.shape
    assert jnp.allclose(ln_out, ln_ref, atol=1e-4, rtol=1e-4), "LayerNorm mismatch"

    # 2) fused encoder layer (the two LayerNorm sublayers around MHA / FFN)
    out = jax.block_until_ready(encoder_layer_forward(x, params))
    ref = reference_forward(x, params)
    assert out.shape == (B, S, D)
    # approx=True softmax reciprocal -> slightly looser tolerance than exact math
    assert jnp.allclose(out, ref, atol=2e-3, rtol=2e-3), "encoder layer mismatch vs reference"

    print("KERNEL_OK")
</pallas_src>

<mosaic_0001>
module attributes {stable_mosaic.version = 11 : i64} {
  func.func @layer_norm_kernel(%arg0: memref<16x32xf32, #tpu.memory_space<vmem>>, %arg1: memref<1x32xf32, #tpu.memory_space<vmem>>, %arg2: memref<1x32xf32, #tpu.memory_space<vmem>>, %arg3: memref<16x32xf32, #tpu.memory_space<vmem>>) attributes {dimension_semantics = [], scalar_prefetch = 0 : i64, scratch_operands = 0 : i64, tpu.core_type = #tpu.core_type<tc>} {
    %c0 = arith.constant 0 : index
    %c0_0 = arith.constant 0 : index
    %0 = vector.load %arg0[%c0, %c0_0] : memref<16x32xf32, #tpu.memory_space<vmem>>, vector<16x32xf32>
    %c0_1 = arith.constant 0 : index
    %c0_2 = arith.constant 0 : index
    %1 = vector.load %arg1[%c0_1, %c0_2] : memref<1x32xf32, #tpu.memory_space<vmem>>, vector<1x32xf32>
    %c0_3 = arith.constant 0 : index
    %c0_4 = arith.constant 0 : index
    %2 = vector.load %arg2[%c0_3, %c0_4] : memref<1x32xf32, #tpu.memory_space<vmem>>, vector<1x32xf32>
    %cst = arith.constant dense<0.000000e+00> : vector<16xf32>
    %3 = vector.multi_reduction <add>, %0, %cst [1] : vector<16x32xf32> to vector<16xf32>
    %4 = vector.shape_cast %3 : vector<16xf32> to vector<16x1xf32>
    %cst_5 = arith.constant 3.200000e+01 : f32
    %5 = vector.broadcast %cst_5 : f32 to vector<16x1xf32>
    %6 = arith.divf %4, %5 : vector<16x1xf32>
    %7 = vector.broadcast %6 : vector<16x1xf32> to vector<16x32xf32>
    %8 = arith.subf %0, %7 : vector<16x32xf32>
    %9 = arith.mulf %8, %8 : vector<16x32xf32>
    %cst_6 = arith.constant dense<0.000000e+00> : vector<16xf32>
    %10 = vector.multi_reduction <add>, %9, %cst_6 [1] : vector<16x32xf32> to vector<16xf32>
    %11 = vector.shape_cast %10 : vector<16xf32> to vector<16x1xf32>
    %cst_7 = arith.constant 3.200000e+01 : f32
    %12 = vector.broadcast %cst_7 : f32 to vector<16x1xf32>
    %13 = arith.divf %11, %12 : vector<16x1xf32>
    %14 = vector.broadcast %6 : vector<16x1xf32> to vector<16x32xf32>
    %15 = arith.subf %0, %14 : vector<16x32xf32>
    %cst_8 = arith.constant 9.99999996E-13 : f32
    %16 = vector.broadcast %cst_8 : f32 to vector<16x1xf32>
    %17 = arith.addf %13, %16 : vector<16x1xf32>
    %18 = math.rsqrt %17 : vector<16x1xf32>
    %19 = vector.broadcast %18 : vector<16x1xf32> to vector<16x32xf32>
    %20 = arith.mulf %15, %19 : vector<16x32xf32>
    %21 = vector.broadcast %1 : vector<1x32xf32> to vector<16x32xf32>
    %22 = arith.mulf %21, %20 : vector<16x32xf32>
    %23 = vector.broadcast %2 : vector<1x32xf32> to vector<16x32xf32>
    %24 = arith.addf %22, %23 : vector<16x32xf32>
    %c0_9 = arith.constant 0 : index
    %c0_10 = arith.constant 0 : index
    %25 = vector.load %arg3[%c0_9, %c0_10] : memref<16x32xf32, #tpu.memory_space<vmem>>, vector<16x32xf32>
    tpu.vector_store %arg3[%c0_9, %c0_10], %24 {strides = array<i32>} : memref<16x32xf32, #tpu.memory_space<vmem>>, vector<16x32xf32>,
    return
  }
}

</mosaic_0001>

<bundles_post_ra>
// kernel: layer_norm.1
= control target key start
LH: loop header
LB: loop body
LE: loop exit
PB: predicated region body
PF: predicated region fallthrough
CT: control target
= control target key end

     0   :  { %8 = vsyncpa [#allocation3], 0  ;;  %s220_s0 = inlined_call_operand.hbm [shape: f32[16,32], index: 0, kind: input, shape index: {}]   ;;  %s221_s1 = inlined_call_operand.vmem [shape: f32[1,32], index: 1, kind: input, shape index: {}]   ;;  %s222_s2 = inlined_call_operand.vmem [shape: f32[1,32], index: 2, kind: input, shape index: {}]   ;;  %s223_s3 = inlined_call_operand.hbm [shape: f32[16,32], index: 3, kind: output, shape index: {}]  }
   0x1   :  { %9 = vsyncpa [#allocation4], 0  ;;  %s154_s12 = smov [#allocation2]   ;;  %s106_s16 = scalar_lea.hbm %s220_s0, 256 }
   0x2   :  { %s15_s13 = sshll.u32 %s154_s12, 4  ;;  %p107_p0 = scmp.ne.s32.totalorder %s220_s0, %s106_s16  ;;  %s16_s13 = int_to_ptr.vmem [resolvable:$true] %s15_s13 }
   0x3   :  { %p110_p1 = scmp.lt.u32.totalorder %s106_s16, %s220_s0 }
   0x5   :  { %p112_p2 = pnand %p110_p1, %p107_p0 }
   0x7   :  { %115 = shalt.err (!%p112_p2)
}
   0x8   :  { %s116_s21 = scalar_lea.vmem %s16_s13, 256  ;;  %p121_p4 = scmp.lt.s32.totalorder %s16_s13, %s16_s13 }
   0x9   :  { %p117_p3 = scmp.ne.s32.totalorder %s16_s13, %s116_s21  ;;  %p122_p5 = scmp.lt.s32.totalorder %s116_s21, %s116_s21 }
   0xb   :  { %p123_p6 = por %p122_p5, %p121_p4 }
   0xd   :  { %p124_p7 = pnand %p123_p6, %p117_p3 }
   0xf   :  { %127 = shalt.err (!%p124_p7)
}
  0x10   :  { %s155_s22 = smov 128   ;;  %s156_s23 = smov 8  }
  0x11   :  { %21 = dma.hbm_to_vmem [thread:$0]  %s220_s0, 256, %s16_s13, [#allocation3], %s155_s22, %s155_s22, %s156_s23  }
  0x12   :  { %150 = dma.done.wait [#allocation3], 256  }
  0x13   :  { %151 = vsyncadd [#allocation3], 4294967040  ;;  %vm33_vm0 = vcmask 261120   ;;  %v29_v0 = vld [vmem:[#allocation2] sm:$0xff]  ;;  %v30_v1 = vld [vmem:[#allocation2 + $0x8] sm:$0xff]  ;;  %s157_s29 = smov [#allocation5]  }
  0x14   :  { %v34_v2 = vsel %vm33_vm0, %v29_v0, 0.0  ;;  %v37_v3 = vsel %vm33_vm0, %v30_v1, 0.0  ;;  %v96_v21 = vld [vmem:[%s221_s1] ss:$0 sm:$0xff]  ;;  %s84_s30 = sshll.u32 %s157_s29, 4  ;;  %s85_s30 = int_to_ptr.vmem [resolvable:$true] %s84_s30 }
  0x15   :  { %35 = vadd.xlane.f32.xlu0 %v34_v2  ;;  %v97_v23 = vld [vmem:[%s222_s2] ss:$0 sm:$0xff]  ;;  %s128_s4 = scalar_lea.vmem %s85_s30, 256  ;;  %p133_p9 = scmp.lt.s32.totalorder %s85_s30, %s85_s30 }
  0x16   :  { %p129_p8 = scmp.ne.s32.totalorder %s85_s30, %s128_s4  ;;  %p134_p10 = scmp.lt.s32.totalorder %s128_s4, %s128_s4 }
  0x18   :  { %p135_p11 = por %p134_p10, %p133_p9 }
  0x19   :  { %38 = vadd.xlane.f32.xlu0 %v37_v3 }
  0x1a   :  { %p136_p12 = pnand %p135_p11, %p129_p8 }
  0xa2   :  { %v36_v4 = vpop.xlane.xlu0 %35 }
  0xa3   :  { %v41_v5 = vmul.f32 0.03125, %v36_v4 }
  0xa5   :  { %v43_v6 = vsub.f32 %v29_v0, %v41_v5 }
  0xa6   :  { %v39_v7 = vpop.xlane.xlu0 %38 }
  0xa7   :  { %v42_v8 = vmul.f32 0.03125, %v39_v7  ;;  %v45_v9 = vmul.f32 %v43_v6, %v43_v6 }
  0xa9   :  { %v44_v10 = vsub.f32 %v30_v1, %v42_v8  ;;  %v47_v11 = vsel %vm33_vm0, %v45_v9, 0.0 }
  0xaa   :  { %48 = vadd.xlane.f32.xlu1 %v47_v11 }
  0xab   :  { %v46_v12 = vmul.f32 %v44_v10, %v44_v10 }
  0xad   :  { %v50_v13 = vsel %vm33_vm0, %v46_v12, 0.0 }
  0xae   :  { %51 = vadd.xlane.f32.xlu1 %v50_v13 }
 0x137   :  { %v49_v14 = vpop.xlane.xlu1 %48 }
 0x138   :  { %v53_v15 = vmul.f32 0.03125, %v49_v14 }
 0x13a   :  { %v55_v16 = vadd.f32 1e-12, %v53_v15 }
 0x13b   :  { %v52_v17 = vpop.xlane.xlu1 %51 }
 0x13c   :  { %102 = vrsqrt.f32 %v55_v16  ;;  %v54_v18 = vmul.f32 0.03125, %v52_v17 }
 0x13e   :  { %v56_v19 = vadd.f32 1e-12, %v54_v18 }
 0x140   :  { %104 = vrsqrt.f32 %v56_v19 }
 0x146   :  { %v103_v20 = vpop.eup %102 }
 0x147   :  { %v59_v22 = vmul.f32 %v103_v20, %v43_v6 }
 0x149   :  { %v67_v24 = vmul.f32 %v96_v21, %v59_v22 }
 0x14a   :  { %v105_v25 = vpop.eup %104 }
 0x14b   :  { %v60_v26 = vmul.f32 %v105_v25, %v44_v10  ;;  %v75_v27 = vadd.f32 %v97_v23, %v67_v24 }
 0x14d   :  { %v68_v28 = vmul.f32 %v96_v21, %v60_v26  ;;  %77 = vst.msk [vmem:[#allocation5] sm:$0xff] %vm33_vm0, %v75_v27 }
 0x14f   :  { %v76_v29 = vadd.f32 %v97_v23, %v68_v28 }
 0x151   :  { %78 = vst.msk [vmem:[#allocation5 + $0x8] sm:$0xff] %vm33_vm0, %v76_v29 }
 0x152   :  { %139 = shalt.err (!%p136_p12)
}
 0x153   :  { %s140_s5 = scalar_lea.hbm %s223_s3, 256 }
 0x154   :  { %p141_p13 = scmp.ne.s32.totalorder %s223_s3, %s140_s5  ;;  %p144_p0 = scmp.lt.u32.totalorder %s140_s5, %s223_s3 }
 0x156   :  { %p146_p1 = pnand %p144_p0, %p141_p13 }
 0x158   :  { %149 = shalt.err (!%p146_p1)
}
 0x159   :  { %90 = dma.vmem_to_hbm [thread:$0]  %s85_s30, 256, %s223_s3, [#allocation4], %s155_s22, %s155_s22, %s156_s23  }
 0x15a   :  { %152 = dma.done.wait [#allocation4], 256  }
 0x15b   :  { %153 = vsyncadd [#allocation4], 4294967040 }
 0x15c   :  { %94 = vsyncpa [#allocation3], 1 }
 0x15d   :  { %95 = vsyncpa [#allocation4], 1 }

</bundles_post_ra>
